<compile_context>
chip_gen: v5e
topology: v5e:2x2
jax: 0.10.0
libtpu: 0.0.40
codegen_flags: <defaults>
</compile_context>

<pallas_src>
import jax
import jax.numpy as jnp
from jax.experimental import pallas as pl
from jax.experimental.pallas import tpu as pltpu


def _round_up(a, b):
    return ((a + b - 1) // b) * b


def _outconv_kernel(w_ref, b_ref, x_ref, o_ref):
    """1x1 conv on one spatial tile, spatial dim lane-dense.

    w_ref : SMEM (Cout, Cin) f32  -- scalar reads
    b_ref : SMEM (Cout,)     f32  -- scalar reads
    x_ref : VMEM (1, Cin, ts)
    o_ref : VMEM (1, Cout, ts)
    """
    cout = o_ref.shape[1]
    cin = x_ref.shape[1]
    x = x_ref[0].astype(jnp.float32)              # (Cin, ts), lanes = spatial
    for co in range(cout):                        # Cin*Cout VPU multiply-adds
        acc = x[0:1, :] * w_ref[co, 0]
        for ci in range(1, cin):
            acc = acc + x[ci:ci + 1, :] * w_ref[co, ci]
        o_ref[0, co:co + 1, :] = (acc + b_ref[co]).astype(o_ref.dtype)


def outconv_pallas(x_nchw, weight, bias, *, spatial_tile_cap=2048):
    """1x1 Conv2d forward (PyTorch OutConv semantics).

    x_nchw : (N, Cin, H, W) float32
    weight : (Cout, Cin, 1, 1) float32   (PyTorch conv weight layout)
    bias   : (Cout,) float32
    returns: (N, Cout, H, W) float32
    """
    N, Cin, H, W = x_nchw.shape
    Cout = weight.shape[0]
    S = H * W

    # Lane-aligned spatial tile; pad ragged spatial sizes instead of asserting.
    ts = min(spatial_tile_cap, _round_up(S, 128))
    S_pad = _round_up(S, ts)

    x = x_nchw.reshape(N, Cin, S)                  # free reshape (contiguous)
    if S_pad != S:
        x = jnp.pad(x, ((0, 0), (0, 0), (0, S_pad - S)))

    w = weight.reshape(Cout, Cin).astype(jnp.float32)
    b = bias.astype(jnp.float32)

    grid = (N, S_pad // ts)

    itemsize = jnp.dtype(x_nchw.dtype).itemsize
    cost = pl.CostEstimate(
        flops=2 * N * S_pad * Cin * Cout,
        transcendentals=0,
        bytes_accessed=(N * Cin * S_pad + N * Cout * S_pad) * itemsize
        + (w.size + b.size) * 4,
    )

    out = pl.pallas_call(
        _outconv_kernel,
        out_shape=jax.ShapeDtypeStruct((N, Cout, S_pad), x_nchw.dtype),
        grid_spec=pltpu.PrefetchScalarGridSpec(
            num_scalar_prefetch=0,
            grid=grid,
            in_specs=[
                pl.BlockSpec(memory_space=pltpu.MemorySpace.SMEM),    # weights
                pl.BlockSpec(memory_space=pltpu.MemorySpace.SMEM),    # bias
                pl.BlockSpec((1, Cin, ts), lambda n, s: (n, 0, s)),   # x tile
            ],
            out_specs=pl.BlockSpec((1, Cout, ts), lambda n, s: (n, 0, s)),
        ),
        compiler_params=pltpu.CompilerParams(
            dimension_semantics=("parallel", "parallel"),
        ),
        cost_estimate=cost,
    )(w, b, x)

    if S_pad != S:
        out = out[:, :, :S]
    return out.reshape(N, Cout, H, W)              # free reshape, no transpose


if __name__ == "__main__":
    # Shapes implied by OutConv(in_channels=4, out_channels=3) on a small image.
    N, Cin, Cout, H, Wd = 2, 4, 3, 16, 16

    key = jax.random.PRNGKey(0)
    kx, kw, kb = jax.random.split(key, 3)

    x = jax.random.normal(kx, (N, Cin, H, Wd), dtype=jnp.float32)
    # Deterministic param init (mimics PyTorch Conv2d uniform init bounds).
    fan_in = Cin * 1 * 1
    bound = 1.0 / (fan_in ** 0.5)
    weight = jax.random.uniform(kw, (Cout, Cin, 1, 1), jnp.float32, -bound, bound)
    bias = jax.random.uniform(kb, (Cout,), jnp.float32, -bound, bound)

    out = outconv_pallas(x, weight, bias)
    jax.block_until_ready(out)

    # Sanity check against a plain-JAX reference of the same 1x1 conv.
    ref = (
        jnp.einsum("nchw,oc->nohw", x, weight.reshape(Cout, Cin))
        + bias.reshape(1, Cout, 1, 1)
    )
    assert out.shape == (N, Cout, H, Wd)
    assert jnp.allclose(out, ref, atol=1e-5, rtol=1e-5)

    print("KERNEL_OK")
</pallas_src>

<mosaic_0001>
module attributes {stable_mosaic.version = 11 : i64} {
  func.func @_outconv_kernel(%arg0: i32, %arg1: i32, %arg2: memref<3x4xf32, #tpu.memory_space<smem>>, %arg3: memref<3xf32, #tpu.memory_space<smem>>, %arg4: memref<1x4x256xf32, #tpu.memory_space<vmem>>, %arg5: memref<1x3x256xf32, #tpu.memory_space<vmem>>) attributes {dimension_semantics = [#tpu.dimension_semantics<parallel>, #tpu.dimension_semantics<parallel>], iteration_bounds = array<i64: 2, 1>, scalar_prefetch = 0 : i64, scratch_operands = 0 : i64, tpu.core_type = #tpu.core_type<tc>, window_params = [{transform_indices = @transform_0, window_bounds = array<i64: 3, 4>}, {transform_indices = @transform_1, window_bounds = array<i64: 3>}, {transform_indices = @transform_2, window_bounds = array<i64: 1, 4, 256>}, {transform_indices = @transform_3, window_bounds = array<i64: 1, 3, 256>}]} {
    %c0 = arith.constant 0 : index
    %c0_0 = arith.constant 0 : index
    %c0_1 = arith.constant 0 : index
    %0 = vector.load %arg4[%c0, %c0_0, %c0_1] : memref<1x4x256xf32, #tpu.memory_space<vmem>>, vector<1x4x256xf32>
    %1 = vector.shape_cast %0 : vector<1x4x256xf32> to vector<4x256xf32>
    %2 = vector.extract_strided_slice %1 {offsets = [0, 0], sizes = [1, 256], strides = [1, 1]} : vector<4x256xf32> to vector<1x256xf32>
    %c0_2 = arith.constant 0 : index
    %c0_3 = arith.constant 0 : index
    %3 = memref.load %arg2[%c0_2, %c0_3] : memref<3x4xf32, #tpu.memory_space<smem>>
    %4 = vector.broadcast %3 : f32 to vector<1x256xf32>
    %5 = arith.mulf %2, %4 : vector<1x256xf32>
    %6 = vector.extract_strided_slice %1 {offsets = [1, 0], sizes = [1, 256], strides = [1, 1]} : vector<4x256xf32> to vector<1x256xf32>
    %c0_4 = arith.constant 0 : index
    %c1 = arith.constant 1 : index
    %7 = memref.load %arg2[%c0_4, %c1] : memref<3x4xf32, #tpu.memory_space<smem>>
    %8 = vector.broadcast %7 : f32 to vector<1x256xf32>
    %9 = arith.mulf %6, %8 : vector<1x256xf32>
    %10 = arith.addf %5, %9 : vector<1x256xf32>
    %11 = vector.extract_strided_slice %1 {offsets = [2, 0], sizes = [1, 256], strides = [1, 1]} : vector<4x256xf32> to vector<1x256xf32>
    %c0_5 = arith.constant 0 : index
    %c2 = arith.constant 2 : index
    %12 = memref.load %arg2[%c0_5, %c2] : memref<3x4xf32, #tpu.memory_space<smem>>
    %13 = vector.broadcast %12 : f32 to vector<1x256xf32>
    %14 = arith.mulf %11, %13 : vector<1x256xf32>
    %15 = arith.addf %10, %14 : vector<1x256xf32>
    %16 = vector.extract_strided_slice %1 {offsets = [3, 0], sizes = [1, 256], strides = [1, 1]} : vector<4x256xf32> to vector<1x256xf32>
    %c0_6 = arith.constant 0 : index
    %c3 = arith.constant 3 : index
    %17 = memref.load %arg2[%c0_6, %c3] : memref<3x4xf32, #tpu.memory_space<smem>>
    %18 = vector.broadcast %17 : f32 to vector<1x256xf32>
    %19 = arith.mulf %16, %18 : vector<1x256xf32>
    %20 = arith.addf %15, %19 : vector<1x256xf32>
    %c0_7 = arith.constant 0 : index
    %21 = memref.load %arg3[%c0_7] : memref<3xf32, #tpu.memory_space<smem>>
    %22 = vector.broadcast %21 : f32 to vector<1x256xf32>
    %23 = arith.addf %20, %22 : vector<1x256xf32>
    %c0_8 = arith.constant 0 : index
    %c0_9 = arith.constant 0 : index
    %c0_10 = arith.constant 0 : index
    %24 = vector.load %arg5[%c0_8, %c0_9, %c0_10] : memref<1x3x256xf32, #tpu.memory_space<vmem>>, vector<1x1x256xf32>
    %25 = vector.shape_cast %24 : vector<1x1x256xf32> to vector<1x256xf32>
    %26 = vector.shape_cast %23 : vector<1x256xf32> to vector<1x1x256xf32>
    tpu.vector_store %arg5[%c0_8, %c0_9, %c0_10], %26 {strides = array<i32>} : memref<1x3x256xf32, #tpu.memory_space<vmem>>, vector<1x1x256xf32>,
    %27 = vector.extract_strided_slice %1 {offsets = [0, 0], sizes = [1, 256], strides = [1, 1]} : vector<4x256xf32> to vector<1x256xf32>
    %c1_11 = arith.constant 1 : index
    %c0_12 = arith.constant 0 : index
    %28 = memref.load %arg2[%c1_11, %c0_12] : memref<3x4xf32, #tpu.memory_space<smem>>
    %29 = vector.broadcast %28 : f32 to vector<1x256xf32>
    %30 = arith.mulf %27, %29 : vector<1x256xf32>
    %31 = vector.extract_strided_slice %1 {offsets = [1, 0], sizes = [1, 256], strides = [1, 1]} : vector<4x256xf32> to vector<1x256xf32>
    %c1_13 = arith.constant 1 : index
    %c1_14 = arith.constant 1 : index
    %32 = memref.load %arg2[%c1_13, %c1_14] : memref<3x4xf32, #tpu.memory_space<smem>>
    %33 = vector.broadcast %32 : f32 to vector<1x256xf32>
    %34 = arith.mulf %31, %33 : vector<1x256xf32>
    %35 = arith.addf %30, %34 : vector<1x256xf32>
    %36 = vector.extract_strided_slice %1 {offsets = [2, 0], sizes = [1, 256], strides = [1, 1]} : vector<4x256xf32> to vector<1x256xf32>
    %c1_15 = arith.constant 1 : index
    %c2_16 = arith.constant 2 : index
    %37 = memref.load %arg2[%c1_15, %c2_16] : memref<3x4xf32, #tpu.memory_space<smem>>
    %38 = vector.broadcast %37 : f32 to vector<1x256xf32>
    %39 = arith.mulf %36, %38 : vector<1x256xf32>
    %40 = arith.addf %35, %39 : vector<1x256xf32>
    %41 = vector.extract_strided_slice %1 {offsets = [3, 0], sizes = [1, 256], strides = [1, 1]} : vector<4x256xf32> to vector<1x256xf32>
    %c1_17 = arith.constant 1 : index
    %c3_18 = arith.constant 3 : index
    %42 = memref.load %arg2[%c1_17, %c3_18] : memref<3x4xf32, #tpu.memory_space<smem>>
    %43 = vector.broadcast %42 : f32 to vector<1x256xf32>
    %44 = arith.mulf %41, %43 : vector<1x256xf32>
    %45 = arith.addf %40, %44 : vector<1x256xf32>
    %c1_19 = arith.constant 1 : index
    %46 = memref.load %arg3[%c1_19] : memref<3xf32, #tpu.memory_space<smem>>
    %47 = vector.broadcast %46 : f32 to vector<1x256xf32>
    %48 = arith.addf %45, %47 : vector<1x256xf32>
    %c0_20 = arith.constant 0 : index
    %c1_21 = arith.constant 1 : index
    %c0_22 = arith.constant 0 : index
    %49 = vector.load %arg5[%c0_20, %c1_21, %c0_22] : memref<1x3x256xf32, #tpu.memory_space<vmem>>, vector<1x1x256xf32>
    %50 = vector.shape_cast %49 : vector<1x1x256xf32> to vector<1x256xf32>
    %51 = vector.shape_cast %48 : vector<1x256xf32> to vector<1x1x256xf32>
    tpu.vector_store %arg5[%c0_20, %c1_21, %c0_22], %51 {strides = array<i32>} : memref<1x3x256xf32, #tpu.memory_space<vmem>>, vector<1x1x256xf32>,
    %52 = vector.extract_strided_slice %1 {offsets = [0, 0], sizes = [1, 256], strides = [1, 1]} : vector<4x256xf32> to vector<1x256xf32>
    %c2_23 = arith.constant 2 : index
    %c0_24 = arith.constant 0 : index
    %53 = memref.load %arg2[%c2_23, %c0_24] : memref<3x4xf32, #tpu.memory_space<smem>>
    %54 = vector.broadcast %53 : f32 to vector<1x256xf32>
    %55 = arith.mulf %52, %54 : vector<1x256xf32>
    %56 = vector.extract_strided_slice %1 {offsets = [1, 0], sizes = [1, 256], strides = [1, 1]} : vector<4x256xf32> to vector<1x256xf32>
    %c2_25 = arith.constant 2 : index
    %c1_26 = arith.constant 1 : index
    %57 = memref.load %arg2[%c2_25, %c1_26] : memref<3x4xf32, #tpu.memory_space<smem>>
    %58 = vector.broadcast %57 : f32 to vector<1x256xf32>
    %59 = arith.mulf %56, %58 : vector<1x256xf32>
    %60 = arith.addf %55, %59 : vector<1x256xf32>
    %61 = vector.extract_strided_slice %1 {offsets = [2, 0], sizes = [1, 256], strides = [1, 1]} : vector<4x256xf32> to vector<1x256xf32>
    %c2_27 = arith.constant 2 : index
    %c2_28 = arith.constant 2 : index
    %62 = memref.load %arg2[%c2_27, %c2_28] : memref<3x4xf32, #tpu.memory_space<smem>>
    %63 = vector.broadcast %62 : f32 to vector<1x256xf32>
    %64 = arith.mulf %61, %63 : vector<1x256xf32>
    %65 = arith.addf %60, %64 : vector<1x256xf32>
    %66 = vector.extract_strided_slice %1 {offsets = [3, 0], sizes = [1, 256], strides = [1, 1]} : vector<4x256xf32> to vector<1x256xf32>
    %c2_29 = arith.constant 2 : index
    %c3_30 = arith.constant 3 : index
    %67 = memref.load %arg2[%c2_29, %c3_30] : memref<3x4xf32, #tpu.memory_space<smem>>
    %68 = vector.broadcast %67 : f32 to vector<1x256xf32>
    %69 = arith.mulf %66, %68 : vector<1x256xf32>
    %70 = arith.addf %65, %69 : vector<1x256xf32>
    %c2_31 = arith.constant 2 : index
    %71 = memref.load %arg3[%c2_31] : memref<3xf32, #tpu.memory_space<smem>>
    %72 = vector.broadcast %71 : f32 to vector<1x256xf32>
    %73 = arith.addf %70, %72 : vector<1x256xf32>
    %c0_32 = arith.constant 0 : index
    %c2_33 = arith.constant 2 : index
    %c0_34 = arith.constant 0 : index
    %74 = vector.load %arg5[%c0_32, %c2_33, %c0_34] : memref<1x3x256xf32, #tpu.memory_space<vmem>>, vector<1x1x256xf32>
    %75 = vector.shape_cast %74 : vector<1x1x256xf32> to vector<1x256xf32>
    %76 = vector.shape_cast %73 : vector<1x256xf32> to vector<1x1x256xf32>
    tpu.vector_store %arg5[%c0_32, %c2_33, %c0_34], %76 {strides = array<i32>} : memref<1x3x256xf32, #tpu.memory_space<vmem>>, vector<1x1x256xf32>,
    return
  }
  func.func @transform_0(%arg0: i32, %arg1: i32) -> (i32, i32) {
    %c0_i32 = arith.constant 0 : i32
    %c0_i32_0 = arith.constant 0 : i32
    %c0_i32_1 = arith.constant 0 : i32
    return %c0_i32, %c0_i32_0 : i32, i32
  }
  func.func @transform_1(%arg0: i32, %arg1: i32) -> i32 {
    %c0_i32 = arith.constant 0 : i32
    %c0_i32_0 = arith.constant 0 : i32
    return %c0_i32 : i32
  }
  func.func @transform_2(%arg0: i32, %arg1: i32) -> (i32, i32, i32) {
    %c0_i32 = arith.constant 0 : i32
    %c0_i32_0 = arith.constant 0 : i32
    return %arg0, %c0_i32, %arg1 : i32, i32, i32
  }
  func.func @transform_3(%arg0: i32, %arg1: i32) -> (i32, i32, i32) {
    %c0_i32 = arith.constant 0 : i32
    %c0_i32_0 = arith.constant 0 : i32
    return %arg0, %c0_i32, %arg1 : i32, i32, i32
  }
}

</mosaic_0001>

<bundles_post_ra>
// kernel: tpu_custom_call.1
= control target key start
LH: loop header
LB: loop body
LE: loop exit
PB: predicated region body
PF: predicated region fallthrough
CT: control target
= control target key end

     0   :  { %8 = vsyncpa [#allocation4], 0  ;;  %s885_s0 = inlined_call_operand.hbm [shape: f32[3,4], index: 0, kind: input, shape index: {}]   ;;  %s886_s1 = inlined_call_operand.hbm [shape: f32[3], index: 1, kind: input, shape index: {}]   ;;  %s887_s2 = inlined_call_operand.hbm [shape: f32[2,4,256], index: 2, kind: input, shape index: {}]   ;;  %s888_s3 = inlined_call_operand.vmem [shape: f32[2,3,256], index: 3, kind: output, shape index: {}]  }
   0x1   :  { %9 = vsyncpa [#allocation6], 0 }
   0x2   :  { %10 = vsyncpa [#allocation3], 0 }
   0x3   :  { %12 = vsyncpa [#allocation3 + $0x1], 0  ;;  %s737_s12 = smov 0   ;;  %s739_s13 = smov 0  }
   0x4   :  { %s741_s14 = smov 0   ;;  %s743_s15 = smov 0  }
   0x5   :  { %s745_s16 = smov 0   ;;  %s747_s17 = smov 0  }
   0x6 LB: > { %s476_s18 = sadd.s32 4294967295, %s713_s17   ;;  %p94_p0 = scmp.ne.s32.totalorder %s697_s13, %s693_s12  ;;  %s713_s17 = sphi %s747_s17, %s18_s17   ;;  %s709_s16 = sphi %s745_s16, %s899_s16   ;;  %s705_s15 = sphi %s743_s15, %s898_s15   ;;  %s701_s14 = sphi %s741_s14, %s897_s14   ;;  %s697_s13 = sphi %s739_s13, %s896_s13   ;;  %s693_s12 = sphi %s737_s12, %s895_s12  }
   0x7   : > { %p767_p1 = scmp.eq.s32.totalorder %s476_s18, 0  ;;  %p478_p2 = scmp.ge.s32.totalorder %s713_s17, 1 }
   0x8   : > { %p133_p3 = scmp.lt.s32.totalorder %s713_s17, 3  ;;  %s145_s23 = sshll.u32 %s885_s0, 4  ;;  %s146_s23 = int_to_ptr.hbm [resolvable:$true] %s145_s23 }
   0x9   : > { %p775_p4 = por %p767_p1, %p94_p0  ;;  %s155_s27 = sshll.u32 %s886_s1, 4  ;;  %s156_s27 = int_to_ptr.hbm [resolvable:$true] %s155_s27 }
   0xa   : > { %p782_p5 = pnand %p478_p2, %p133_p3  ;;  %s715_s28 = smov [#allocation2]  }
   0xb   : > { %s716_s29 = smov [#allocation5]   ;;  %s30_s30 = sadd.s32 1, %s709_s16 }
   0xc   : > { %p529_p6 = pneg %p782_p5  ;;  %s81_s4 = sadd.s32 1, %s701_s14 }
   0xd   : > { %p32_p8 = scmp.ge.s32.totalorder %s30_s30, 2  ;;  %p88_p9 = scmp.ne.s32.totalorder %s701_s14, %s697_s13 }
   0xe   : > { %p530_p7 = pnand %p529_p6, %p767_p1  ;;  %p89_p10 = scmp.eq.s32.totalorder %s713_s17, 0 }
   0xf   : > { %p542_p11 = scmp.lt.s32.totalorder %s713_s17, 2  ;;  %s901_s30 = smov (%p32_p8, %s30_s30), 0 }
  0x10   : > { %532 = dma.hbm_to_smem (!%p530_p7), %s146_s23, 64, %s715_s28, [#allocation4]  }
  0x11   : > { %535 = dma.hbm_to_smem (!%p530_p7), %s156_s27, 16, %s716_s29, [#allocation6]  }
  0x12   : > { %p801_p12 = por %p89_p10, %p88_p9  ;;  %s166_s6 = sand.u32 1, %s701_s14  }
  0x13   : > { %s76_s7 = ssub.s32 %s709_s16, %s901_s30  ;;  %s482_s8 = sshll.u32 %s166_s6, 3 }
  0x14   : > { %p79_p13 = scmp.eq.s32.totalorder %s76_s7, 0  ;;  %s517_s9 = sshll.u32 %s709_s16, 3 }
  0x15   : > { %s177_s18 = scalar_lea.hbm %s887_s2, %s517_s9  ;;  %s170_s21 = scalar_lea.vmem [#allocation7], %s482_s8 }
  0x16   : > { %s810_s10 = scalar_select %p79_p13, %s701_s14, %s81_s4  }
  0x17   : > { %s181_s22 = sshll.u32 %s170_s21, 4  ;;  %s179_s23 = sshll.u32 %s177_s18, 4  ;;  %s182_s22 = int_to_ptr.vmem [resolvable:$true] %s181_s22  ;;  %s180_s23 = int_to_ptr.hbm [resolvable:$true] %s179_s23 }
  0x18   : > { %p537_p0 = pnand %p542_p11, %p801_p12  ;;  %s167_s25 = scalar_lea.sflag [#allocation3], %s166_s6 }
  0x19   : > { %190 = sbr.rel (%p782_p5) target bundleno = 73 (0x49), region = 32 }
  0x1a   : > { %539 = dma.hbm_to_vmem [thread:$0]  (!%p537_p0), %s180_s23, 128, %s182_s22, %s167_s25  }
  0x1e   : > { %680 = dma.done.wait (%p767_p1), [#allocation4], 64  }
  0x1f   : > { %682 = vsyncadd (%p767_p1), [#allocation4], 4294967232 }
  0x20   : > { %684 = dma.done.wait (%p767_p1), [#allocation6], 16  }
  0x21   : > { %686 = vsyncadd (%p767_p1), [#allocation6], 4294967280  ;;  %s202_s26 = sand.u32 1, %s697_s13  }
  0x22   : > { %s488_s27 = sshll.u32 %s202_s26, 3  ;;  %s203_s28 = scalar_lea.sflag [#allocation3], %s202_s26 }
  0x23   : > { %s206_s29 = scalar_lea.vmem [#allocation7], %s488_s27 }
  0x24   : > { %688 = dma.done.wait (%p775_p4), %s203_s28, 128  }
  0x25   : > { %690 = vsyncadd (%p775_p4), %s203_s28, 4294967168 }
  0x26   : > { %212 = sfence }
  0x27   : > { %p237_p2 = scmp.lt.s32.totalorder %s705_s15, 1  ;;  %s247_s24 = sld [smem:[#allocation2]]  ;;  %v246_v0 = vld [vmem:[%s206_s29] sm:$0xff]  ;;  %v282_v20 = vlaneseq  ;;  %vm279_vm0 = vcmask 1040384  }
  0x28   : > { %s491_s4 = sld [smem:[#allocation2 + $0x1]] }
  0x29   : > { %s903_s15 = smov (!%p237_p2, %s705_s15), 1  ;;  %s493_s19 = sld [smem:[#allocation2 + $0x2]]  ;;  %vm848_vm1 = vcmp.lt.s32.totalorder %v282_v20, 256 }
  0x2a   : > { %s495_s5 = sld [smem:[#allocation2 + $0x3]]  ;;  %s518_s23 = sshll.u32 %s903_s15, 3 }
  0x2b   : > { %s838_s6 = sld [smem:[#allocation5]]  ;;  %s244_s15 = scalar_lea.vmem %s888_s3, %s518_s23 }
  0x2c   : > { %s497_s7 = sld [smem:[#allocation2 + $0x80]] }
  0x2d   : > { %v248_v1 = vstv %s247_s24  ;;  %s498_s8 = sld [smem:[#allocation2 + $0x81]] }
  0x2e   : > { %v251_v2 = vstv %s491_s4  ;;  %v249_v3 = vmul.f32 %v248_v1, %v246_v0  ;;  %s500_s20 = sld [smem:[#allocation2 + $0x82]] }
  0x2f   : > { %v252_v4 = vmul.f32 %v251_v2, %v246_v0  ;;  %v259_v5 = vstv %s493_s19  ;;  %s502_s9 = sld [smem:[#allocation2 + $0x83]] }
  0x30   : > { %v260_v7 = vmul.f32 %v259_v5, %v246_v0  ;;  %v267_v8 = vstv %s495_s5  ;;  %s840_s11 = sld [smem:[#allocation5 + $0x1]] }
  0x31   : > { %v492_v6 = vrot.slane %v252_v4, 9  ;;  %v268_v9 = vmul.f32 %v267_v8, %v246_v0  ;;  %s506_s12 = sld [smem:[#allocation2 + $0x100]]  ;;  %v275_v19 = vstv %s838_s6 }
  0x32   : > { %v494_v11 = vrot.slane %v260_v7, 10  ;;  %v288_v12 = vstv %s497_s7  ;;  %s842_s18 = sld [smem:[#allocation2 + $0x101]] }
  0x33   : > { %v257_v10 = vadd.f32 %v492_v6, %v249_v3  ;;  %v496_v13 = vrot.slane %v268_v9, 11  ;;  %v291_v14 = vstv %s498_s8  ;;  %s509_s21 = sld [smem:[#allocation2 + $0x102]]  ;;  %v289_v16 = vmul.f32 %v288_v12, %v246_v0 }
  0x34   : > { %v292_v17 = vmul.f32 %v291_v14, %v246_v0  ;;  %v299_v18 = vstv %s500_s20  ;;  %s844_s22 = sld [smem:[#allocation2 + $0x103]] }
  0x35   : > { %v265_v15 = vadd.f32 %v494_v11, %v257_v10  ;;  %v300_v21 = vmul.f32 %v299_v18, %v246_v0  ;;  %v307_v22 = vstv %s502_s9  ;;  %s513_s25 = sld [smem:[#allocation5 + $0x2]] }
  0x36   : > { %v499_v24 = vrot.slane %v292_v17, 9  ;;  %v308_v25 = vmul.f32 %v307_v22, %v246_v0  ;;  %v315_v39 = vstv %s840_s11 }
  0x37   : > { %v273_v23 = vadd.f32 %v496_v13, %v265_v15  ;;  %v501_v26 = vrot.slane %v300_v21, 10  ;;  %v324_v27 = vstv %s506_s12 }
  0x38   : > { %v297_v29 = vadd.f32 %v499_v24, %v289_v16  ;;  %v503_v30 = vrot.slane %v308_v25, 11  ;;  %v325_v32 = vmul.f32 %v324_v27, %v246_v0  ;;  %v327_v33 = vstv %s842_s18 }
  0x39   : > { %v276_v28 = vadd.f32 %v275_v19, %v273_v23  ;;  %v335_v34 = vstv %s509_s21  ;;  %v328_v37 = vmul.f32 %v327_v33, %v246_v0 }
  0x3a   : > { %v305_v36 = vadd.f32 %v501_v26, %v297_v29  ;;  %v336_v38 = vmul.f32 %v335_v34, %v246_v0  ;;  %v343_v40 = vstv %s844_s22 }
  0x3b   : > { %v278_v35 = vrot.slane %v276_v28, 3  ;;  %v508_v43 = vrot.slane %v328_v37, 9  ;;  %v344_v45 = vmul.f32 %v343_v40, %v246_v0  ;;  %v351_v51 = vstv %s513_s25 }
  0x3c   : > { %v313_v42 = vadd.f32 %v503_v30, %v305_v36  ;;  %v510_v44 = vrot.slane %v336_v38, 10 }
  0x3d   : > { %v280_v41 = vsel %vm279_vm0, %v276_v28, %v278_v35  ;;  %v333_v47 = vadd.f32 %v508_v43, %v325_v32  ;;  %v512_v48 = vrot.slane %v344_v45, 11 }
  0x3e   : > { %286 = vst.msk [vmem:[%s244_s15] ss:$4 sm:$0x3] %vm848_vm1, %v280_v41  ;;  %v316_v46 = vadd.f32 %v315_v39, %v313_v42 }
  0x3f   : > { %v341_v50 = vadd.f32 %v510_v44, %v333_v47 }
  0x40   : > { %v318_v49 = vrot.slane %v316_v46, 3 }
  0x41   : > { %v349_v53 = vadd.f32 %v512_v48, %v341_v50 }
  0x42   : > { %v319_v52 = vsel %vm279_vm0, %v316_v46, %v318_v49 }
  0x43   : > { %505 = vst.msk [vmem:[%s244_s15 + $0x1] ss:$4 sm:$0x3] %vm848_vm1, %v319_v52  ;;  %v352_v54 = vadd.f32 %v351_v51, %v349_v53 }
  0x45   : > { %v354_v55 = vrot.slane %v352_v54, 3 }
  0x47   : > { %v355_v56 = vsel %vm279_vm0, %v352_v54, %v354_v55 }
  0x48   : > { %514 = vst.msk [vmem:[%s244_s15 + $0x2] ss:$4 sm:$0x3] %vm848_vm1, %v355_v56 }
  0x49 PF: > { %s18_s17 = sadd.s32 1, %s713_s17   ;;  %s895_s12 = smov %s697_s13 }
  0x4a   : > { %p15_p1 = scmp.ge.s32.totalorder %s18_s17, 4   ;;  %s896_s13 = smov %s701_s14 }
  0x4b   : > { %s897_s14 = smov %s810_s10  ;;  %s898_s15 = smov %s709_s16 }
  0x4c   : > { %s899_s16 = smov %s901_s30  ;;  %17 = sbr.rel (!%p15_p1) target bundleno = 6 (0x6), region = 83 }
  0x51   :  { %389 = vsyncpa [#allocation3], 1 }
  0x52   :  { %391 = vsyncpa [#allocation3 + $0x1], 1 }
  0x53   :  { %392 = vsyncpa [#allocation4], 1 }
  0x54   :  { %394 = vsyncpa [#allocation4 + $0x1], 1 }
  0x55   :  { %395 = vsyncpa [#allocation6], 1 }

</bundles_post_ra>
